<compile_context>
chip_gen: v5e
topology: v5e:2x2
jax: 0.10.0
libtpu: 0.0.40
codegen_flags: <defaults>
</compile_context>

<pallas_src>
import functools
import math

import jax
import jax.numpy as jnp
from jax import lax
from jax.experimental import pallas as pl
from jax.experimental.pallas import tpu as pltpu

SEG = 128  # lane-padded per-sample segment length


# ------------------------- fused Pallas kernel -------------------------

def _qnn_kernel(x_ref, w1_ref, b1_ref, wr_ref, br_ref, bns_ref, bnt_ref,
                m_ref, fcw_ref, fcb_ref, o_ref, *, dims):
    """Whole QNN forward for one batch tile; activations never leave VMEM.

    Activation layout: channels on sublanes, (batch-tile x 128-lane segments)
    folded on lanes: shape (C, B*128).  Downsampled stages keep their values
    at dilated lane positions (dil = 1, 2, 4, 8) inside each segment.

    Ref shapes:
      x_ref   (Cin_p, B*128)         input tile, zero tail per segment
      w1_ref  (Cout_p, K1*Cin_p)     conv1 weight, tap-major fused
      b1_ref  (Cout_p, 1)
      wr_ref  (4, Cout_p, K*Cout_p)  [rb1.c1, rb1.c2, rb2.c1, rb2.c2]
      br_ref  (4, Cout_p, 1)
      bns_ref (5, Cout_p, 1)         folded BN scale [bn1, rb1.bn1, rb1.bn2, rb2.bn1, rb2.bn2]
      bnt_ref (5, Cout_p, 1)         folded BN shift
      m_ref   (5, 1, B*128)          per-stage validity masks (dilation + tail)
      fcw_ref (128, n_classes)       fc weight interleaved at the final dilation
      fcb_ref (1, n_classes)
      o_ref   (B, Cout_p, n_classes)
    """
    f32 = jnp.float32
    B, BL = dims['B'], dims['BL']
    K1, K = dims['K1'], dims['K']

    def tap(x, d):
        # result[:, l] = x[:, l + d] (cyclic over the whole lane axis; the
        # wrap-around lanes land in a masked/zero segment tail, which also
        # supplies the zero padding of padded / 'same' convolutions).
        if d == 0:
            return x
        return pltpu.roll(x, (-d) % BL, axis=1)

    def conv(x, w, bias, offsets):
        # All K taps fused into ONE MXU matmul: (Cout, K*Cin) @ (K*Cin, B*128).
        xk = jnp.concatenate([tap(x, d) for d in offsets], axis=0)
        return jnp.dot(w, xk, preferred_element_type=f32) + bias

    def bn_relu(x, i):
        # eval-mode BN folded to per-channel scale/shift, fused ReLU, then the
        # per-lane validity mask (zeroes dilation holes + segment tail so that
        # roll-wrap reads see zeros where PyTorch would see zero padding).
        return jnp.maximum(x * bns_ref[i] + bnt_ref[i], 0.0) * m_ref[i]

    x = x_ref[...]

    # conv1 (kernel K1, stride 1, 'same') + bn1/relu + MaxPool1d(2)
    p1 = (K1 - 1) // 2
    h = conv(x, w1_ref[...], b1_ref[...], [k - p1 for k in range(K1)])
    h = bn_relu(h, 0)
    h = jnp.maximum(h, tap(h, 1))          # pool kept in place: valid @ lanes 2j

    dil = 2
    for blk in range(2):
        pad = dims['rb_pads'][blk]
        t = bn_relu(h, 1 + 2 * blk)        # dropout1: eval mode -> identity
        # stride-2 conv expressed with dilated tap offsets; valid @ m*dil*2
        c = conv(t, wr_ref[2 * blk], br_ref[2 * blk],
                 [(k - pad) * dil for k in range(K)])
        dil2 = dil * 2
        c = bn_relu(c, 2 + 2 * blk)        # dropout2: eval mode -> identity
        # stride-1 'same' conv at the new dilation
        c = conv(c, wr_ref[2 * blk + 1], br_ref[2 * blk + 1],
                 [(k - (K - 1) // 2) * dil2 for k in range(K)])
        sc = jnp.maximum(h, tap(h, dil))   # MaxPool1d(2) shortcut, valid @ m*dil2
        h = c + sc
        dil = dil2

    # fc over the valid dilated positions of each sample's 128-lane segment
    fcw = fcw_ref[...]
    fcb = fcb_ref[...]
    for b in range(B):                     # static, small unroll
        seg = h[:, b * SEG:(b + 1) * SEG]  # (Cout_p, 128) aligned lane slice
        o_ref[b] = (jnp.dot(seg, fcw, preferred_element_type=f32)
                    + fcb).astype(o_ref.dtype)


# ------------------------- wrapper -------------------------

def qnn_forward(params, x, *, b_tile=None):
    f32 = jnp.float32
    N, Cin, L = x.shape
    Cout, _, K1 = params['conv1_w'].shape
    K = params['rb1']['conv1_w'].shape[2]
    ncls, l_fc = params['fc_w'].shape
    assert K1 % 2 == 1 and K % 2 == 1, "odd kernels assumed for 'same' padding"

    # geometry (pinned by fc in_features, exactly like the PyTorch module)
    l1 = L // 2                                   # after MaxPool1d(2)
    lr1 = (l1 + 2 * 1 - K) // 2 + 1               # after resblock1 (stride 2, pad 1)
    lr2 = (lr1 + 2 * 0 - K) // 2 + 1              # after resblock2 (stride 2, pad 0)
    assert lr1 == l1 // 2 and lr2 == lr1 // 2, "residual shapes must match"
    assert lr2 == l_fc, (lr2, l_fc)
    final_dil = 8                                 # 2 (pool) * 2 (rb1) * 2 (rb2)
    # roll-wrap padding needs a zero tail at least as long as the max tap reach
    assert L + (K1 - 1) // 2 <= SEG and L + (K - 1) // 2 * final_dil <= SEG

    # batch tiling: fold b_tile samples into the lane axis per grid step;
    # default gives >=2 grid steps for N>=2 (v7x megacore) capped at 8/step.
    if b_tile is None:
        b_tile = max(1, min(8, (N + 1) // 2))
    G = -(-N // b_tile)
    N_pad = G * b_tile
    BL = b_tile * SEG

    Cin_p = ((Cin + 7) // 8) * 8                  # pad channels to sublane multiple
    Cout_p = ((Cout + 7) // 8) * 8

    # ---- input prep: zero-pad (channels, length, batch) and fold batch into lanes
    xp = jnp.zeros((N_pad, Cin_p, SEG), f32).at[:N, :Cin, :L].set(x.astype(f32))
    xf = (xp.reshape(G, b_tile, Cin_p, SEG)
            .transpose(0, 2, 1, 3)
            .reshape(G, Cin_p, BL))

    # ---- weight prep (tiny, weight-sized tensors only)
    def fuse_w(w, cin_p):                         # (Cout, Cin, K) -> (Cout_p, K*cin_p)
        co, ci, k = w.shape
        wp = jnp.zeros((Cout_p, cin_p, k), f32).at[:co, :ci, :].set(w.astype(f32))
        return jnp.transpose(wp, (0, 2, 1)).reshape(Cout_p, k * cin_p)

    def pad_vec(v):                               # (Cout,) -> (Cout_p, 1)
        return jnp.zeros((Cout_p, 1), f32).at[:Cout, 0].set(v.astype(f32))

    w1f = fuse_w(params['conv1_w'], Cin_p)
    b1 = pad_vec(params['conv1_b'])

    rbs = (params['rb1'], params['rb2'])
    wr = jnp.stack([fuse_w(rb[nm + '_w'], Cout_p)
                    for rb in rbs for nm in ('conv1', 'conv2')], axis=0)
    br = jnp.stack([pad_vec(rb[nm + '_b'])
                    for rb in rbs for nm in ('conv1', 'conv2')], axis=0)

    def fold_bn(p, eps=1e-5):
        s = p['gamma'] / jnp.sqrt(p['var'] + eps)
        t = p['beta'] - p['mean'] * s
        return pad_vec(s), pad_vec(t)

    bn_ps = [params['bn1'], params['rb1']['bn1'], params['rb1']['bn2'],
             params['rb2']['bn1'], params['rb2']['bn2']]
    folded = [fold_bn(p) for p in bn_ps]
    bns = jnp.stack([s for s, _ in folded], axis=0)        # (5, Cout_p, 1)
    bnt = jnp.stack([t for _, t in folded], axis=0)

    # per-stage validity masks: keep lanes that are a multiple of the stage
    # dilation and inside the valid extent; zero everything else (incl. tail).
    pos = jnp.arange(SEG)

    def mk_mask(dil, count):
        m = ((pos % dil) == 0) & (pos < dil * count)
        return jnp.tile(m.astype(f32), b_tile).reshape(1, BL)

    masks = jnp.stack([mk_mask(1, L), mk_mask(2, l1), mk_mask(4, lr1),
                       mk_mask(4, lr1), mk_mask(8, lr2)], axis=0)  # (5, 1, BL)

    # fc weight interleaved at the final dilation so stale lanes contribute 0
    fcw = jnp.zeros((SEG, ncls), f32).at[final_dil * jnp.arange(l_fc)].set(
        params['fc_w'].T.astype(f32))
    fcb = params['fc_b'].reshape(1, ncls).astype(f32)

    dims = dict(B=b_tile, BL=BL, K1=K1, K=K, rb_pads=(1, 0))
    kernel = functools.partial(_qnn_kernel, dims=dims)

    out = pl.pallas_call(
        kernel,
        out_shape=jax.ShapeDtypeStruct((N_pad, Cout_p, ncls), f32),
        grid=(G,),
        in_specs=[
            pl.BlockSpec((None, Cin_p, BL), lambda g: (g, 0, 0)),   # batch tile
            pl.BlockSpec(w1f.shape, lambda g: (0, 0)),
            pl.BlockSpec(b1.shape, lambda g: (0, 0)),
            pl.BlockSpec(wr.shape, lambda g: (0, 0, 0)),
            pl.BlockSpec(br.shape, lambda g: (0, 0, 0)),
            pl.BlockSpec(bns.shape, lambda g: (0, 0, 0)),
            pl.BlockSpec(bnt.shape, lambda g: (0, 0, 0)),
            pl.BlockSpec(masks.shape, lambda g: (0, 0, 0)),
            pl.BlockSpec(fcw.shape, lambda g: (0, 0)),
            pl.BlockSpec(fcb.shape, lambda g: (0, 0)),
        ],
        out_specs=pl.BlockSpec((b_tile, Cout_p, ncls), lambda g: (g, 0, 0)),
        compiler_params=pltpu.CompilerParams(
            dimension_semantics=("parallel",)),
    )(xf, w1f, b1, wr, br, bns, bnt, masks, fcw, fcb)
    return out[:N, :Cout, :]


# ------------------------- parameter init -------------------------

def init_params(key, c_in, c_out, k, n_classes):
    keys = jax.random.split(key, 12)

    def uinit(kk, shape, fan_in):
        bound = 1.0 / math.sqrt(fan_in)
        return jax.random.uniform(kk, shape, jnp.float32, -bound, bound)

    def bn(c):
        return dict(gamma=jnp.ones((c,), jnp.float32),
                    beta=jnp.zeros((c,), jnp.float32),
                    mean=jnp.zeros((c,), jnp.float32),
                    var=jnp.ones((c,), jnp.float32))

    def resblock_params(k0, k1, k2, k3):
        return {
            'bn1': bn(c_out),
            'conv1_w': uinit(k0, (c_out, c_out, k), c_out * k),
            'conv1_b': uinit(k1, (c_out,), c_out * k),
            'bn2': bn(c_out),
            'conv2_w': uinit(k2, (c_out, c_out, k), c_out * k),
            'conv2_b': uinit(k3, (c_out,), c_out * k),
        }

    return {
        'conv1_w': uinit(keys[0], (c_out, c_in, 7), c_in * 7),
        'conv1_b': uinit(keys[1], (c_out,), c_in * 7),
        'bn1': bn(c_out),
        'rb1': resblock_params(keys[2], keys[3], keys[4], keys[5]),
        'rb2': resblock_params(keys[6], keys[7], keys[8], keys[9]),
        'fc_w': uinit(keys[10], (n_classes, 12), 12),
        'fc_b': uinit(keys[11], (n_classes,), 12),
    }


# ------------------------- pure-JAX reference -------------------------

def _conv1d_ref(x, w, b, stride, pad):
    out = lax.conv_general_dilated(
        x, w, window_strides=(stride,), padding=[(pad, pad)],
        dimension_numbers=('NCH', 'OIH', 'NCH'))
    return out + b[None, :, None]


def _bn_relu_ref(x, p, eps=1e-5):
    scale = p['gamma'] / jnp.sqrt(p['var'] + eps)
    shift = p['beta'] - p['mean'] * scale
    return jnp.maximum(x * scale[None, :, None] + shift[None, :, None], 0.0)


def _maxpool2_ref(x):
    N, C, L = x.shape
    Lo = L // 2
    return x[:, :, :2 * Lo].reshape(N, C, Lo, 2).max(-1)


def _resblock_ref(x, p, stride, pad):
    K = p['conv1_w'].shape[2]
    out = _bn_relu_ref(x, p['bn1'])
    out = _conv1d_ref(out, p['conv1_w'], p['conv1_b'], stride, pad)
    out = _bn_relu_ref(out, p['bn2'])
    out = _conv1d_ref(out, p['conv2_w'], p['conv2_b'], 1, (K - 1) // 2)
    res = x if out.shape == x.shape else _maxpool2_ref(x)
    return out + res


def qnn_ref(params, x):
    h = _conv1d_ref(x, params['conv1_w'], params['conv1_b'], 1, 3)
    h = _bn_relu_ref(h, params['bn1'])
    h = _maxpool2_ref(h)
    h = _resblock_ref(h, params['rb1'], 2, 1)
    h = _resblock_ref(h, params['rb2'], 2, 0)
    return jnp.einsum('ncl,kl->nck', h, params['fc_w']) + params['fc_b']


# ------------------------- main -------------------------

if __name__ == "__main__":
    key = jax.random.PRNGKey(0)
    pkey, xkey, xkey2 = jax.random.split(key, 3)

    n_input_channels, n_output_channels = 4, 8
    kernel_size, n_classes = 3, 5
    seq_len = 100   # 100 -> pool 50 -> rb1 25 -> rb2 12 == nn.Linear(12, .) input

    params = init_params(pkey, n_input_channels, n_output_channels,
                         kernel_size, n_classes)
    fwd = jax.jit(qnn_forward)

    # small batch (b_tile=1, grid=2)
    x = jax.random.normal(xkey, (2, n_input_channels, seq_len), jnp.float32)
    out = jax.block_until_ready(fwd(params, x))
    ref = qnn_ref(params, x)
    assert out.shape == (2, n_output_channels, n_classes), out.shape
    assert jnp.allclose(out, ref, atol=2e-3, rtol=2e-3), \
        float(jnp.max(jnp.abs(out - ref)))

    # ragged batch (b_tile=4, grid=2, padded last tile) exercises lane folding
    x2 = jax.random.normal(xkey2, (7, n_input_channels, seq_len), jnp.float32)
    out2 = jax.block_until_ready(fwd(params, x2))
    ref2 = qnn_ref(params, x2)
    assert out2.shape == (7, n_output_channels, n_classes), out2.shape
    assert jnp.allclose(out2, ref2, atol=2e-3, rtol=2e-3), \
        float(jnp.max(jnp.abs(out2 - ref2)))

    print("KERNEL_OK")
</pallas_src>

<mosaic_0001>
module attributes {stable_mosaic.version = 11 : i64} {
  func.func @_qnn_kernel(%arg0: i32, %arg1: memref<1x8x128xf32, #tpu.memory_space<vmem>>, %arg2: memref<8x56xf32, #tpu.memory_space<vmem>>, %arg3: memref<8x1xf32, #tpu.memory_space<vmem>>, %arg4: memref<4x8x24xf32, #tpu.memory_space<vmem>>, %arg5: memref<4x8x1xf32, #tpu.memory_space<vmem>>, %arg6: memref<5x8x1xf32, #tpu.memory_space<vmem>>, %arg7: memref<5x8x1xf32, #tpu.memory_space<vmem>>, %arg8: memref<5x1x128xf32, #tpu.memory_space<vmem>>, %arg9: memref<128x5xf32, #tpu.memory_space<vmem>>, %arg10: memref<1x5xf32, #tpu.memory_space<vmem>>, %arg11: memref<1x8x5xf32, #tpu.memory_space<vmem>>) attributes {dimension_semantics = [#tpu.dimension_semantics<parallel>], iteration_bounds = array<i64: 2>, scalar_prefetch = 0 : i64, scratch_operands = 0 : i64, tpu.core_type = #tpu.core_type<tc>, window_params = [{transform_indices = @transform_0, window_bounds = array<i64: 1, 8, 128>}, {pipeline_mode = #tpu.pipeline_mode<synchronous>, transform_indices = @transform_1, window_bounds = array<i64: 8, 56>}, {pipeline_mode = #tpu.pipeline_mode<synchronous>, transform_indices = @transform_2, window_bounds = array<i64: 8, 1>}, {pipeline_mode = #tpu.pipeline_mode<synchronous>, transform_indices = @transform_3, window_bounds = array<i64: 4, 8, 24>}, {pipeline_mode = #tpu.pipeline_mode<synchronous>, transform_indices = @transform_4, window_bounds = array<i64: 4, 8, 1>}, {pipeline_mode = #tpu.pipeline_mode<synchronous>, transform_indices = @transform_5, window_bounds = array<i64: 5, 8, 1>}, {pipeline_mode = #tpu.pipeline_mode<synchronous>, transform_indices = @transform_6, window_bounds = array<i64: 5, 8, 1>}, {pipeline_mode = #tpu.pipeline_mode<synchronous>, transform_indices = @transform_7, window_bounds = array<i64: 5, 1, 128>}, {pipeline_mode = #tpu.pipeline_mode<synchronous>, transform_indices = @transform_8, window_bounds = array<i64: 128, 5>}, {pipeline_mode = #tpu.pipeline_mode<synchronous>, transform_indices = @transform_9, window_bounds = array<i64: 1, 5>}, {transform_indices = @transform_10, window_bounds = array<i64: 1, 8, 5>}]} {
    %c0 = arith.constant 0 : index
    %c0_0 = arith.constant 0 : index
    %c0_1 = arith.constant 0 : index
    %0 = vector.load %arg1[%c0, %c0_0, %c0_1] : memref<1x8x128xf32, #tpu.memory_space<vmem>>, vector<1x8x128xf32>
    %1 = vector.shape_cast %0 : vector<1x8x128xf32> to vector<8x128xf32>
    %c0_2 = arith.constant 0 : index
    %c0_3 = arith.constant 0 : index
    %2 = vector.load %arg2[%c0_2, %c0_3] : memref<8x56xf32, #tpu.memory_space<vmem>>, vector<8x56xf32>
    %c0_4 = arith.constant 0 : index
    %c0_5 = arith.constant 0 : index
    %3 = vector.load %arg3[%c0_4, %c0_5] : memref<8x1xf32, #tpu.memory_space<vmem>>, vector<8x1xf32>
    %c3_i32 = arith.constant 3 : i32
    %4 = tpu.dynamic_rotate %1 by %c3_i32 dim 1 : vector<8x128xf32>, i32 -> vector<8x128xf32>
    %c2_i32 = arith.constant 2 : i32
    %5 = tpu.dynamic_rotate %1 by %c2_i32 dim 1 : vector<8x128xf32>, i32 -> vector<8x128xf32>
    %c1_i32 = arith.constant 1 : i32
    %6 = tpu.dynamic_rotate %1 by %c1_i32 dim 1 : vector<8x128xf32>, i32 -> vector<8x128xf32>
    %c127_i32 = arith.constant 127 : i32
    %7 = tpu.dynamic_rotate %1 by %c127_i32 dim 1 : vector<8x128xf32>, i32 -> vector<8x128xf32>
    %c126_i32 = arith.constant 126 : i32
    %8 = tpu.dynamic_rotate %1 by %c126_i32 dim 1 : vector<8x128xf32>, i32 -> vector<8x128xf32>
    %c125_i32 = arith.constant 125 : i32
    %9 = tpu.dynamic_rotate %1 by %c125_i32 dim 1 : vector<8x128xf32>, i32 -> vector<8x128xf32>
    %10 = tpu.concatenate %4, %5, %6, %1, %7, %8, %9 in 0 : vector<8x128xf32>, vector<8x128xf32>, vector<8x128xf32>, vector<8x128xf32>, vector<8x128xf32>, vector<8x128xf32>, vector<8x128xf32> -> vector<56x128xf32>
    %cst = arith.constant dense<0.000000e+00> : vector<8x128xf32>
    %11 = tpu.matmul %2, %10, %cst {dimension_numbers = #tpu.dot_dimension_numbers<[1], [0], [0], [1], [0, 0, 1, 1], [], []>} : vector<8x56xf32>, vector<56x128xf32>, vector<8x128xf32> -> vector<8x128xf32>
    %12 = vector.broadcast %3 : vector<8x1xf32> to vector<8x128xf32>
    %13 = arith.addf %11, %12 : vector<8x128xf32>
    %c0_6 = arith.constant 0 : index
    %c0_7 = arith.constant 0 : index
    %c0_8 = arith.constant 0 : index
    %14 = vector.load %arg6[%c0_6, %c0_7, %c0_8] : memref<5x8x1xf32, #tpu.memory_space<vmem>>, vector<1x8x1xf32>
    %15 = vector.shape_cast %14 : vector<1x8x1xf32> to vector<8x1xf32>
    %16 = vector.broadcast %15 : vector<8x1xf32> to vector<8x128xf32>
    %17 = arith.mulf %13, %16 : vector<8x128xf32>
    %c0_9 = arith.constant 0 : index
    %c0_10 = arith.constant 0 : index
    %c0_11 = arith.constant 0 : index
    %18 = vector.load %arg7[%c0_9, %c0_10, %c0_11] : memref<5x8x1xf32, #tpu.memory_space<vmem>>, vector<1x8x1xf32>
    %19 = vector.shape_cast %18 : vector<1x8x1xf32> to vector<8x1xf32>
    %20 = vector.broadcast %19 : vector<8x1xf32> to vector<8x128xf32>
    %21 = arith.addf %17, %20 : vector<8x128xf32>
    %cst_12 = arith.constant 0.000000e+00 : f32
    %22 = vector.broadcast %cst_12 : f32 to vector<8x128xf32>
    %23 = arith.maximumf %21, %22 : vector<8x128xf32>
    %c0_13 = arith.constant 0 : index
    %c0_14 = arith.constant 0 : index
    %c0_15 = arith.constant 0 : index
    %24 = vector.load %arg8[%c0_13, %c0_14, %c0_15] : memref<5x1x128xf32, #tpu.memory_space<vmem>>, vector<1x1x128xf32>
    %25 = vector.shape_cast %24 : vector<1x1x128xf32> to vector<1x128xf32>
    %26 = vector.broadcast %25 : vector<1x128xf32> to vector<8x128xf32>
    %27 = arith.mulf %23, %26 : vector<8x128xf32>
    %c127_i32_16 = arith.constant 127 : i32
    %28 = tpu.dynamic_rotate %27 by %c127_i32_16 dim 1 : vector<8x128xf32>, i32 -> vector<8x128xf32>
    %29 = arith.maximumf %27, %28 : vector<8x128xf32>
    %c1 = arith.constant 1 : index
    %c0_17 = arith.constant 0 : index
    %c0_18 = arith.constant 0 : index
    %30 = vector.load %arg6[%c1, %c0_17, %c0_18] : memref<5x8x1xf32, #tpu.memory_space<vmem>>, vector<1x8x1xf32>
    %31 = vector.shape_cast %30 : vector<1x8x1xf32> to vector<8x1xf32>
    %32 = vector.broadcast %31 : vector<8x1xf32> to vector<8x128xf32>
    %33 = arith.mulf %29, %32 : vector<8x128xf32>
    %c1_19 = arith.constant 1 : index
    %c0_20 = arith.constant 0 : index
    %c0_21 = arith.constant 0 : index
    %34 = vector.load %arg7[%c1_19, %c0_20, %c0_21] : memref<5x8x1xf32, #tpu.memory_space<vmem>>, vector<1x8x1xf32>
    %35 = vector.shape_cast %34 : vector<1x8x1xf32> to vector<8x1xf32>
    %36 = vector.broadcast %35 : vector<8x1xf32> to vector<8x128xf32>
    %37 = arith.addf %33, %36 : vector<8x128xf32>
    %cst_22 = arith.constant 0.000000e+00 : f32
    %38 = vector.broadcast %cst_22 : f32 to vector<8x128xf32>
    %39 = arith.maximumf %37, %38 : vector<8x128xf32>
    %c1_23 = arith.constant 1 : index
    %c0_24 = arith.constant 0 : index
    %c0_25 = arith.constant 0 : index
    %40 = vector.load %arg8[%c1_23, %c0_24, %c0_25] : memref<5x1x128xf32, #tpu.memory_space<vmem>>, vector<1x1x128xf32>
    %41 = vector.shape_cast %40 : vector<1x1x128xf32> to vector<1x128xf32>
    %42 = vector.broadcast %41 : vector<1x128xf32> to vector<8x128xf32>
    %43 = arith.mulf %39, %42 : vector<8x128xf32>
    %c0_26 = arith.constant 0 : index
    %c0_27 = arith.constant 0 : index
    %c0_28 = arith.constant 0 : index
    %44 = vector.load %arg4[%c0_26, %c0_27, %c0_28] : memref<4x8x24xf32, #tpu.memory_space<vmem>>, vector<1x8x24xf32>
    %45 = vector.shape_cast %44 : vector<1x8x24xf32> to vector<8x24xf32>
    %c0_29 = arith.constant 0 : index
    %c0_30 = arith.constant 0 : index
    %c0_31 = arith.constant 0 : index
    %46 = vector.load %arg5[%c0_29, %c0_30, %c0_31] : memref<4x8x1xf32, #tpu.memory_space<vmem>>, vector<1x8x1xf32>
    %47 = vector.shape_cast %46 : vector<1x8x1xf32> to vector<8x1xf32>
    %c2_i32_32 = arith.constant 2 : i32
    %48 = tpu.dynamic_rotate %43 by %c2_i32_32 dim 1 : vector<8x128xf32>, i32 -> vector<8x128xf32>
    %c126_i32_33 = arith.constant 126 : i32
    %49 = tpu.dynamic_rotate %43 by %c126_i32_33 dim 1 : vector<8x128xf32>, i32 -> vector<8x128xf32>
    %50 = tpu.concatenate %48, %43, %49 in 0 : vector<8x128xf32>, vector<8x128xf32>, vector<8x128xf32> -> vector<24x128xf32>
    %cst_34 = arith.constant dense<0.000000e+00> : vector<8x128xf32>
    %51 = tpu.matmul %45, %50, %cst_34 {dimension_numbers = #tpu.dot_dimension_numbers<[1], [0], [0], [1], [0, 0, 1, 1], [], []>} : vector<8x24xf32>, vector<24x128xf32>, vector<8x128xf32> -> vector<8x128xf32>
    %52 = vector.broadcast %47 : vector<8x1xf32> to vector<8x128xf32>
    %53 = arith.addf %51, %52 : vector<8x128xf32>
    %c2 = arith.constant 2 : index
    %c0_35 = arith.constant 0 : index
    %c0_36 = arith.constant 0 : index
    %54 = vector.load %arg6[%c2, %c0_35, %c0_36] : memref<5x8x1xf32, #tpu.memory_space<vmem>>, vector<1x8x1xf32>
    %55 = vector.shape_cast %54 : vector<1x8x1xf32> to vector<8x1xf32>
    %56 = vector.broadcast %55 : vector<8x1xf32> to vector<8x128xf32>
    %57 = arith.mulf %53, %56 : vector<8x128xf32>
    %c2_37 = arith.constant 2 : index
    %c0_38 = arith.constant 0 : index
    %c0_39 = arith.constant 0 : index
    %58 = vector.load %arg7[%c2_37, %c0_38, %c0_39] : memref<5x8x1xf32, #tpu.memory_space<vmem>>, vector<1x8x1xf32>
    %59 = vector.shape_cast %58 : vector<1x8x1xf32> to vector<8x1xf32>
    %60 = vector.broadcast %59 : vector<8x1xf32> to vector<8x128xf32>
    %61 = arith.addf %57, %60 : vector<8x128xf32>
    %cst_40 = arith.constant 0.000000e+00 : f32
    %62 = vector.broadcast %cst_40 : f32 to vector<8x128xf32>
    %63 = arith.maximumf %61, %62 : vector<8x128xf32>
    %c2_41 = arith.constant 2 : index
    %c0_42 = arith.constant 0 : index
    %c0_43 = arith.constant 0 : index
    %64 = vector.load %arg8[%c2_41, %c0_42, %c0_43] : memref<5x1x128xf32, #tpu.memory_space<vmem>>, vector<1x1x128xf32>
    %65 = vector.shape_cast %64 : vector<1x1x128xf32> to vector<1x128xf32>
    %66 = vector.broadcast %65 : vector<1x128xf32> to vector<8x128xf32>
    %67 = arith.mulf %63, %66 : vector<8x128xf32>
    %c1_44 = arith.constant 1 : index
    %c0_45 = arith.constant 0 : index
    %c0_46 = arith.constant 0 : index
    %68 = vector.load %arg4[%c1_44, %c0_45, %c0_46] : memref<4x8x24xf32, #tpu.memory_space<vmem>>, vector<1x8x24xf32>
    %69 = vector.shape_cast %68 : vector<1x8x24xf32> to vector<8x24xf32>
    %c1_47 = arith.constant 1 : index
    %c0_48 = arith.constant 0 : index
    %c0_49 = arith.constant 0 : index
    %70 = vector.load %arg5[%c1_47, %c0_48, %c0_49] : memref<4x8x1xf32, #tpu.memory_space<vmem>>, vector<1x8x1xf32>
    %71 = vector.shape_cast %70 : vector<1x8x1xf32> to vector<8x1xf32>
    %c4_i32 = arith.constant 4 : i32
    %72 = tpu.dynamic_rotate %67 by %c4_i32 dim 1 : vector<8x128xf32>, i32 -> vector<8x128xf32>
    %c124_i32 = arith.constant 124 : i32
    %73 = tpu.dynamic_rotate %67 by %c124_i32 dim 1 : vector<8x128xf32>, i32 -> vector<8x128xf32>
    %74 = tpu.concatenate %72, %67, %73 in 0 : vector<8x128xf32>, vector<8x128xf32>, vector<8x128xf32> -> vector<24x128xf32>
    %cst_50 = arith.constant dense<0.000000e+00> : vector<8x128xf32>
    %75 = tpu.matmul %69, %74, %cst_50 {dimension_numbers = #tpu.dot_dimension_numbers<[1], [0], [0], [1], [0, 0, 1, 1], [], []>} : vector<8x24xf32>, vector<24x128xf32>, vector<8x128xf32> -> vector<8x128xf32>
    %76 = vector.broadcast %71 : vector<8x1xf32> to vector<8x128xf32>
    %77 = arith.addf %75, %76 : vector<8x128xf32>
    %c126_i32_51 = arith.constant 126 : i32
    %78 = tpu.dynamic_rotate %29 by %c126_i32_51 dim 1 : vector<8x128xf32>, i32 -> vector<8x128xf32>
    %79 = arith.maximumf %29, %78 : vector<8x128xf32>
    %80 = arith.addf %77, %79 : vector<8x128xf32>
    %c3 = arith.constant 3 : index
    %c0_52 = arith.constant 0 : index
    %c0_53 = arith.constant 0 : index
    %81 = vector.load %arg6[%c3, %c0_52, %c0_53] : memref<5x8x1xf32, #tpu.memory_space<vmem>>, vector<1x8x1xf32>
    %82 = vector.shape_cast %81 : vector<1x8x1xf32> to vector<8x1xf32>
    %83 = vector.broadcast %82 : vector<8x1xf32> to vector<8x128xf32>
    %84 = arith.mulf %80, %83 : vector<8x128xf32>
    %c3_54 = arith.constant 3 : index
    %c0_55 = arith.constant 0 : index
    %c0_56 = arith.constant 0 : index
    %85 = vector.load %arg7[%c3_54, %c0_55, %c0_56] : memref<5x8x1xf32, #tpu.memory_space<vmem>>, vector<1x8x1xf32>
    %86 = vector.shape_cast %85 : vector<1x8x1xf32> to vector<8x1xf32>
    %87 = vector.broadcast %86 : vector<8x1xf32> to vector<8x128xf32>
    %88 = arith.addf %84, %87 : vector<8x128xf32>
    %cst_57 = arith.constant 0.000000e+00 : f32
    %89 = vector.broadcast %cst_57 : f32 to vector<8x128xf32>
    %90 = arith.maximumf %88, %89 : vector<8x128xf32>
    %c3_58 = arith.constant 3 : index
    %c0_59 = arith.constant 0 : index
    %c0_60 = arith.constant 0 : index
    %91 = vector.load %arg8[%c3_58, %c0_59, %c0_60] : memref<5x1x128xf32, #tpu.memory_space<vmem>>, vector<1x1x128xf32>
    %92 = vector.shape_cast %91 : vector<1x1x128xf32> to vector<1x128xf32>
    %93 = vector.broadcast %92 : vector<1x128xf32> to vector<8x128xf32>
    %94 = arith.mulf %90, %93 : vector<8x128xf32>
    %c2_61 = arith.constant 2 : index
    %c0_62 = arith.constant 0 : index
    %c0_63 = arith.constant 0 : index
    %95 = vector.load %arg4[%c2_61, %c0_62, %c0_63] : memref<4x8x24xf32, #tpu.memory_space<vmem>>, vector<1x8x24xf32>
    %96 = vector.shape_cast %95 : vector<1x8x24xf32> to vector<8x24xf32>
    %c2_64 = arith.constant 2 : index
    %c0_65 = arith.constant 0 : index
    %c0_66 = arith.constant 0 : index
    %97 = vector.load %arg5[%c2_64, %c0_65, %c0_66] : memref<4x8x1xf32, #tpu.memory_space<vmem>>, vector<1x8x1xf32>
    %98 = vector.shape_cast %97 : vector<1x8x1xf32> to vector<8x1xf32>
    %c124_i32_67 = arith.constant 124 : i32
    %99 = tpu.dynamic_rotate %94 by %c124_i32_67 dim 1 : vector<8x128xf32>, i32 -> vector<8x128xf32>
    %c120_i32 = arith.constant 120 : i32
    %100 = tpu.dynamic_rotate %94 by %c120_i32 dim 1 : vector<8x128xf32>, i32 -> vector<8x128xf32>
    %101 = tpu.concatenate %94, %99, %100 in 0 : vector<8x128xf32>, vector<8x128xf32>, vector<8x128xf32> -> vector<24x128xf32>
    %cst_68 = arith.constant dense<0.000000e+00> : vector<8x128xf32>
    %102 = tpu.matmul %96, %101, %cst_68 {dimension_numbers = #tpu.dot_dimension_numbers<[1], [0], [0], [1], [0, 0, 1, 1], [], []>} : vector<8x24xf32>, vector<24x128xf32>, vector<8x128xf32> -> vector<8x128xf32>
    %103 = vector.broadcast %98 : vector<8x1xf32> to vector<8x128xf32>
    %104 = arith.addf %102, %103 : vector<8x128xf32>
    %c4 = arith.constant 4 : index
    %c0_69 = arith.constant 0 : index
    %c0_70 = arith.constant 0 : index
    %105 = vector.load %arg6[%c4, %c0_69, %c0_70] : memref<5x8x1xf32, #tpu.memory_space<vmem>>, vector<1x8x1xf32>
    %106 = vector.shape_cast %105 : vector<1x8x1xf32> to vector<8x1xf32>
    %107 = vector.broadcast %106 : vector<8x1xf32> to vector<8x128xf32>
    %108 = arith.mulf %104, %107 : vector<8x128xf32>
    %c4_71 = arith.constant 4 : index
    %c0_72 = arith.constant 0 : index
    %c0_73 = arith.constant 0 : index
    %109 = vector.load %arg7[%c4_71, %c0_72, %c0_73] : memref<5x8x1xf32, #tpu.memory_space<vmem>>, vector<1x8x1xf32>
    %110 = vector.shape_cast %109 : vector<1x8x1xf32> to vector<8x1xf32>
    %111 = vector.broadcast %110 : vector<8x1xf32> to vector<8x128xf32>
    %112 = arith.addf %108, %111 : vector<8x128xf32>
    %cst_74 = arith.constant 0.000000e+00 : f32
    %113 = vector.broadcast %cst_74 : f32 to vector<8x128xf32>
    %114 = arith.maximumf %112, %113 : vector<8x128xf32>
    %c4_75 = arith.constant 4 : index
    %c0_76 = arith.constant 0 : index
    %c0_77 = arith.constant 0 : index
    %115 = vector.load %arg8[%c4_75, %c0_76, %c0_77] : memref<5x1x128xf32, #tpu.memory_space<vmem>>, vector<1x1x128xf32>
    %116 = vector.shape_cast %115 : vector<1x1x128xf32> to vector<1x128xf32>
    %117 = vector.broadcast %116 : vector<1x128xf32> to vector<8x128xf32>
    %118 = arith.mulf %114, %117 : vector<8x128xf32>
    %c3_78 = arith.constant 3 : index
    %c0_79 = arith.constant 0 : index
    %c0_80 = arith.constant 0 : index
    %119 = vector.load %arg4[%c3_78, %c0_79, %c0_80] : memref<4x8x24xf32, #tpu.memory_space<vmem>>, vector<1x8x24xf32>
    %120 = vector.shape_cast %119 : vector<1x8x24xf32> to vector<8x24xf32>
    %c3_81 = arith.constant 3 : index
    %c0_82 = arith.constant 0 : index
    %c0_83 = arith.constant 0 : index
    %121 = vector.load %arg5[%c3_81, %c0_82, %c0_83] : memref<4x8x1xf32, #tpu.memory_space<vmem>>, vector<1x8x1xf32>
    %122 = vector.shape_cast %121 : vector<1x8x1xf32> to vector<8x1xf32>
    %c8_i32 = arith.constant 8 : i32
    %123 = tpu.dynamic_rotate %118 by %c8_i32 dim 1 : vector<8x128xf32>, i32 -> vector<8x128xf32>
    %c120_i32_84 = arith.constant 120 : i32
    %124 = tpu.dynamic_rotate %118 by %c120_i32_84 dim 1 : vector<8x128xf32>, i32 -> vector<8x128xf32>
    %125 = tpu.concatenate %123, %118, %124 in 0 : vector<8x128xf32>, vector<8x128xf32>, vector<8x128xf32> -> vector<24x128xf32>
    %cst_85 = arith.constant dense<0.000000e+00> : vector<8x128xf32>
    %126 = tpu.matmul %120, %125, %cst_85 {dimension_numbers = #tpu.dot_dimension_numbers<[1], [0], [0], [1], [0, 0, 1, 1], [], []>} : vector<8x24xf32>, vector<24x128xf32>, vector<8x128xf32> -> vector<8x128xf32>
    %127 = vector.broadcast %122 : vector<8x1xf32> to vector<8x128xf32>
    %128 = arith.addf %126, %127 : vector<8x128xf32>
    %c124_i32_86 = arith.constant 124 : i32
    %129 = tpu.dynamic_rotate %80 by %c124_i32_86 dim 1 : vector<8x128xf32>, i32 -> vector<8x128xf32>
    %130 = arith.maximumf %80, %129 : vector<8x128xf32>
    %131 = arith.addf %128, %130 : vector<8x128xf32>
    %c0_87 = arith.constant 0 : index
    %c0_88 = arith.constant 0 : index
    %132 = vector.load %arg9[%c0_87, %c0_88] : memref<128x5xf32, #tpu.memory_space<vmem>>, vector<128x5xf32>
    %c0_89 = arith.constant 0 : index
    %c0_90 = arith.constant 0 : index
    %133 = vector.load %arg10[%c0_89, %c0_90] : memref<1x5xf32, #tpu.memory_space<vmem>>, vector<1x5xf32>
    %cst_91 = arith.constant dense<0.000000e+00> : vector<8x5xf32>
    %134 = tpu.matmul %131, %132, %cst_91 {dimension_numbers = #tpu.dot_dimension_numbers<[1], [0], [0], [1], [0, 0, 1, 1], [], []>} : vector<8x128xf32>, vector<128x5xf32>, vector<8x5xf32> -> vector<8x5xf32>
    %135 = vector.broadcast %133 : vector<1x5xf32> to vector<8x5xf32>
    %136 = arith.addf %134, %135 : vector<8x5xf32>
    %c0_92 = arith.constant 0 : index
    %c0_93 = arith.constant 0 : index
    %c0_94 = arith.constant 0 : index
    %137 = vector.load %arg11[%c0_92, %c0_93, %c0_94] : memref<1x8x5xf32, #tpu.memory_space<vmem>>, vector<1x8x5xf32>
    %138 = vector.shape_cast %137 : vector<1x8x5xf32> to vector<8x5xf32>
    %139 = vector.shape_cast %136 : vector<8x5xf32> to vector<1x8x5xf32>
    tpu.vector_store %arg11[%c0_92, %c0_93, %c0_94], %139 {strides = array<i32>} : memref<1x8x5xf32, #tpu.memory_space<vmem>>, vector<1x8x5xf32>,
    return
  }
  func.func @transform_0(%arg0: i32) -> (i32, i32, i32) {
    %c0_i32 = arith.constant 0 : i32
    %c0_i32_0 = arith.constant 0 : i32
    %c0_i32_1 = arith.constant 0 : i32
    return %arg0, %c0_i32, %c0_i32_0 : i32, i32, i32
  }
  func.func @transform_1(%arg0: i32) -> (i32, i32) {
    %c0_i32 = arith.constant 0 : i32
    %c0_i32_0 = arith.constant 0 : i32
    %c0_i32_1 = arith.constant 0 : i32
    return %c0_i32, %c0_i32_0 : i32, i32
  }
  func.func @transform_2(%arg0: i32) -> (i32, i32) {
    %c0_i32 = arith.constant 0 : i32
    %c0_i32_0 = arith.constant 0 : i32
    %c0_i32_1 = arith.constant 0 : i32
    return %c0_i32, %c0_i32_0 : i32, i32
  }
  func.func @transform_3(%arg0: i32) -> (i32, i32, i32) {
    %c0_i32 = arith.constant 0 : i32
    %c0_i32_0 = arith.constant 0 : i32
    %c0_i32_1 = arith.constant 0 : i32
    %c0_i32_2 = arith.constant 0 : i32
    return %c0_i32, %c0_i32_0, %c0_i32_1 : i32, i32, i32
  }
  func.func @transform_4(%arg0: i32) -> (i32, i32, i32) {
    %c0_i32 = arith.constant 0 : i32
    %c0_i32_0 = arith.constant 0 : i32
    %c0_i32_1 = arith.constant 0 : i32
    %c0_i32_2 = arith.constant 0 : i32
    return %c0_i32, %c0_i32_0, %c0_i32_1 : i32, i32, i32
  }
  func.func @transform_5(%arg0: i32) -> (i32, i32, i32) {
    %c0_i32 = arith.constant 0 : i32
    %c0_i32_0 = arith.constant 0 : i32
    %c0_i32_1 = arith.constant 0 : i32
    %c0_i32_2 = arith.constant 0 : i32
    return %c0_i32, %c0_i32_0, %c0_i32_1 : i32, i32, i32
  }
  func.func @transform_6(%arg0: i32) -> (i32, i32, i32) {
    %c0_i32 = arith.constant 0 : i32
    %c0_i32_0 = arith.constant 0 : i32
    %c0_i32_1 = arith.constant 0 : i32
    %c0_i32_2 = arith.constant 0 : i32
    return %c0_i32, %c0_i32_0, %c0_i32_1 : i32, i32, i32
  }
  func.func @transform_7(%arg0: i32) -> (i32, i32, i32) {
    %c0_i32 = arith.constant 0 : i32
    %c0_i32_0 = arith.constant 0 : i32
    %c0_i32_1 = arith.constant 0 : i32
    %c0_i32_2 = arith.constant 0 : i32
    return %c0_i32, %c0_i32_0, %c0_i32_1 : i32, i32, i32
  }
  func.func @transform_8(%arg0: i32) -> (i32, i32) {
    %c0_i32 = arith.constant 0 : i32
    %c0_i32_0 = arith.constant 0 : i32
    %c0_i32_1 = arith.constant 0 : i32
    return %c0_i32, %c0_i32_0 : i32, i32
  }
  func.func @transform_9(%arg0: i32) -> (i32, i32) {
    %c0_i32 = arith.constant 0 : i32
    %c0_i32_0 = arith.constant 0 : i32
    %c0_i32_1 = arith.constant 0 : i32
    return %c0_i32, %c0_i32_0 : i32, i32
  }
  func.func @transform_10(%arg0: i32) -> (i32, i32, i32) {
    %c0_i32 = arith.constant 0 : i32
    %c0_i32_0 = arith.constant 0 : i32
    %c0_i32_1 = arith.constant 0 : i32
    return %arg0, %c0_i32, %c0_i32_0 : i32, i32, i32
  }
}

</mosaic_0001>

<bundles_post_ra>
// kernel: qnn_forward.1
= control target key start
LH: loop header
LB: loop body
LE: loop exit
PB: predicated region body
PF: predicated region fallthrough
CT: control target
= control target key end

     0   :  { %s894_s13 = smov 0   ;;  %s1063_s0 = inlined_call_operand.vmem [shape: f32[2,8,128], index: 0, kind: input, shape index: {}]   ;;  %s1064_s1 = inlined_call_operand.vmem [shape: f32[8,56], index: 1, kind: input, shape index: {}]   ;;  %s1065_s2 = inlined_call_operand.vmem [shape: f32[8,1], index: 2, kind: input, shape index: {}]   ;;  %s1066_s3 = inlined_call_operand.vmem [shape: f32[4,8,24], index: 3, kind: input, shape index: {}]   ;;  %s1067_s4 = inlined_call_operand.vmem [shape: f32[4,8,1], index: 4, kind: input, shape index: {}]   ;;  %s1068_s5 = inlined_call_operand.vmem [shape: f32[5,8,1], index: 5, kind: input, shape index: {}]   ;;  %s1069_s6 = inlined_call_operand.vmem [shape: f32[5,8,1], index: 6, kind: input, shape index: {}]   ;;  %s1070_s7 = inlined_call_operand.vmem [shape: f32[5,1,128], index: 7, kind: input, shape index: {}]   ;;  %s1071_s8 = inlined_call_operand.vmem [shape: f32[128,5], index: 8, kind: input, shape index: {}]   ;;  %s1072_s9 = inlined_call_operand.vmem [shape: f32[1,5], index: 9, kind: input, shape index: {}]   ;;  %s1073_s10 = inlined_call_operand.vmem [shape: f32[2,8,5], index: 10, kind: output, shape index: {}]  }
   0x1 LB: > { %s760_s14 = sadd.s32 4294967295, %s826_s13   ;;  %p764_p0 = scmp.ge.s32.totalorder %s826_s13, 1  ;;  %s826_s13 = sphi %s894_s13, %s20_s13  }
   0x2   : > { %p311_p1 = scmp.lt.s32.totalorder %s826_s13, 3 }
   0x4   : > { %p312_p2 = pnand %p764_p0, %p311_p1 }
   0x5   : > { %p347_p3 = scmp.lt.s32.totalorder (!%p312_p2), %s760_s14, 1  ;;  %s828_s19 = smov (!%p312_p2), 125  }
   0x6   : > { %315 = sbr.rel (%p312_p2) target bundleno = 1573 (0x625), region = 60  ;;  %s829_s20 = smov (!%p312_p2), 127  }
   0x7   : > { %s830_s21 = smov (!%p312_p2), 2   ;;  %s831_s22 = smov (!%p312_p2), 126  }
   0x8   : > { %s832_s23 = smov (!%p312_p2), 1   ;;  %s833_s24 = smov (!%p312_p2), 3  }
   0x9   : > { %s835_s27 = smov (!%p312_p2), 4   ;;  %s836_s28 = smov (!%p312_p2), 124  }
   0xa   : > { %s837_s16 = smov (!%p312_p2), 120   ;;  %s838_s30 = smov (!%p312_p2), 8  }
   0xb   : > { %s1075_s14 = smov (!%p347_p3, %s760_s14), 1  ;;  %v357_v1 = vld [vmem:[%s1065_s2] sm:$0xff]  ;;  %v834_v2 = vmov 0   ;;  %v769_v3 = vld [vmem:[%s1069_s6 + $0x8] sm:$0xff]  ;;  %vm375_vm0 = vcmask 457728   ;;  %v773_v34 = vld [vmem:[%s1069_s6 + $0x10] sm:$0xff] }
   0xc   : > { %s765_s15 = sshll.u32 %s1075_s14, 3  ;;  %811 = vset.pattern.permute.xlu0 %v834_v2  ;;  %812 = vset.pattern.permute.xlu1 %v834_v2  ;;  %v399_v4 = vld [vmem:[%s1068_s5] sm:$0xff]  ;;  %v768_v6 = vld [vmem:[%s1068_s5 + $0x8] sm:$0xff]  ;;  %v772_v35 = vld [vmem:[%s1068_s5 + $0x10] sm:$0xff]  ;;  %vm456_vm1 = vcmask 195584   ;;  %vm705_vm2 = vcmask 39936  }
   0xd   : > { %s350_s18 = scalar_lea.vmem %s1063_s0, %s765_s15  ;;  %813 = vset.pattern.permute.xlu2 %v834_v2  ;;  %v406_v5 = vld [vmem:[%s1069_s6] sm:$0xff]  ;;  %v776_v36 = vld [vmem:[%s1067_s4 + $0x8] sm:$0xff]  ;;  %v779_v37 = vld [vmem:[%s1069_s6 + $0x18] sm:$0xff]  ;;  %s354_s17 = scalar_lea.vmem %s1073_s10, %s765_s15 }
   0xe   : > { %v355_v0 = vld [vmem:[%s350_s18] sm:$0xff]  ;;  %v782_v38 = vld [vmem:[%s1067_s4 + $0x10] sm:$0xff]  ;;  %v778_v52 = vld [vmem:[%s1068_s5 + $0x18] sm:$0xff] }
   0xf   : > { %368 = vrot.lane.b32.xlu0 %v355_v0, %s828_s19  ;;  %364 = vrot.lane.b32.xlu1 %v355_v0, %s829_s20  ;;  %v446_v7 = vld [vmem:[%s1067_s4] sm:$0xff]  ;;  %v775_v54 = vld [vmem:[%s1066_s3 + $0x8] sm:$0xff] }
  0x10   : > { %360 = vrot.lane.b32.xlu2 %v355_v0, %s830_s21  ;;  %v356_v14 = vld [vmem:[%s1064_s1] sm:$0xff] }
  0x11   : > { %v814_v22 = vld [vmem:[%s1070_s7] ss:$0 sm:$0xff]  ;;  %v815_v31 = vld [vmem:[%s1070_s7 + $0x1] ss:$0 sm:$0xff]  ;;  %v816_v49 = vld [vmem:[%s1070_s7 + $0x2] ss:$0 sm:$0xff] }
  0x12   : > { %v445_v40 = vld [vmem:[%s1066_s3] sm:$0xff] }
  0x13   : > { %v817_v2 = vld [vmem:[%s1070_s7 + $0x3] ss:$0 sm:$0xff] }
  0x17   : > { %366 = vrot.lane.b32.xlu0 %v355_v0, %s831_s22  ;;  %362 = vrot.lane.b32.xlu1 %v355_v0, %s832_s23 }
  0x18   : > { %358 = vrot.lane.b32.xlu2 %v355_v0, %s833_s24 }
  0x1f   : > { %372 = vperm.xlu0 %811, %v357_v1   ;;  %402 = vperm.xlu1 %812, %v399_v4  }
  0x20   : > { %409 = vperm.xlu2 %813, %v406_v5   ;;  %v785_v5 = vld [vmem:[%s1069_s6 + $0x20] sm:$0xff] }
  0x27   : > { %434 = vperm.xlu0 %811, %v769_v3  }
  0x28   : > { %426 = vperm.xlu2 %813, %v768_v6   ;;  %v784_v6 = vld [vmem:[%s1068_s5 + $0x20] sm:$0xff] }
  0x2f   : > { %453 = vperm.xlu0 %811, %v446_v7   ;;  %v788_v7 = vld [vmem:[%s1067_s4 + $0x18] sm:$0xff] }
  0x6a   : > { %v361_v10 = vpop.permute.xlu2 %360 }
  0x72   : > { %v359_v13 = vpop.permute.xlu2 %358 }
  0x7a   : > { %v410_v20 = vpop.permute.xlu2 %409 }
  0x81   : > { %v369_v8 = vpop.permute.xlu0 %368  ;;  %v365_v9 = vpop.permute.xlu1 %364 }
  0x82   : > { %388 = vmatpush.msra.mxu0 %v369_v8  ;;  %v427_v27 = vpop.permute.xlu2 %426 }
  0x89   : > { %v367_v11 = vpop.permute.xlu0 %366  ;;  %v363_v12 = vpop.permute.xlu1 %362 }
  0x8a   : > { %389 = vmatpush.msra.mxu0 %v367_v11 }
  0x8c   : > { %390 = vmatpush.msra.mxu0 %v365_v9 }
  0x8e   : > { %391 = vmatpush.msra.mxu0 %v355_v0 }
  0x90   : > { %392 = vmatpush.msra.mxu0 %v363_v12 }
  0x91   : > { %v373_v15 = vpop.permute.xlu0 %372  ;;  %v403_v17 = vpop.permute.xlu1 %402 }
  0x92   : > { %393 = vmatpush.msra.mxu0 %v361_v10  ;;  %v781_v10 = vld [vmem:[%s1066_s3 + $0x10] sm:$0xff] }
  0x94   : > { %394 = vmatpush.msra.mxu0 %v359_v13 }
  0x95   : > { %767 = vmatmul.msk.f32.vlgmr.msra.gmra.mxu0 %vm375_vm0, %v356_v14 }
  0x99   : > { %v435_v29 = vpop.permute.xlu0 %434 }
  0xa1   : > { %v454_v42 = vpop.permute.xlu0 %453 }
 0x112   : > { %v396_v16 = vpop.f32.mrf.mxu0 }
 0x113   : > { %v397_v18 = vadd.f32 %v396_v16, %v373_v15 }
 0x115   : > { %v405_v19 = vmul.f32 %v403_v17, %v397_v18  ;;  %v818_v18 = vld [vmem:[%s1070_s7 + $0x4] ss:$0 sm:$0xff] }
 0x117   : > { %v412_v21 = vadd.f32 %v410_v20, %v405_v19 }
 0x119   : > { %v413_v23 = vmax.f32 %v412_v21, 0.0  ;;  %v680_v21 = vld [vmem:[%s1071_s8 + $0x78] sm:$0xff] }
 0x11a   : > { %685 = vmatpush.msra.mxu2 %v680_v21 }
 0x11b   : > { %v418_v24 = vmul.f32 %v814_v22, %v413_v23  ;;  %v679_v22 = vld [vmem:[%s1071_s8 + $0x70] sm:$0xff]  ;;  %v678_v23 = vld [vmem:[%s1071_s8 + $0x68] sm:$0xff] }
 0x11c   : > { %686 = vmatpush.msra.mxu2 %v679_v22 }
 0x11d   : > { %419 = vrot.lane.b32.xlu1 %v418_v24, %s829_s20 }
 0x11e   : > { %687 = vmatpush.msra.mxu2 %v678_v23 }
 0x18f   : > { %v420_v25 = vpop.permute.xlu1 %419 }
 0x190   : > { %v421_v26 = vmax.f32 %v418_v24, %v420_v25  ;;  %v677_v24 = vld [vmem:[%s1071_s8 + $0x60] sm:$0xff] }
 0x191   : > { %688 = vmatpush.msra.mxu2 %v677_v24 }
 0x192   : > { %v429_v28 = vmul.f32 %v427_v27, %v421_v26  ;;  %v675_v27 = vld [vmem:[%s1071_s8 + $0x50] sm:$0xff] }
 0x194   : > { %v437_v30 = vadd.f32 %v435_v29, %v429_v28  ;;  %v674_v28 = vld [vmem:[%s1071_s8 + $0x48] sm:$0xff]  ;;  %v673_v29 = vld [vmem:[%s1071_s8 + $0x40] sm:$0xff] }
 0x196   : > { %v438_v32 = vmax.f32 %v437_v30, 0.0  ;;  %v672_v30 = vld [vmem:[%s1071_s8 + $0x38] sm:$0xff] }
 0x198   : > { %v444_v33 = vmul.f32 %v815_v31, %v438_v32  ;;  %v671_v31 = vld [vmem:[%s1071_s8 + $0x30] sm:$0xff]  ;;  %v670_v32 = vld [vmem:[%s1071_s8 + $0x28] sm:$0xff] }
 0x19a   : > { %447 = vrot.lane.b32.xlu2 %v444_v33, %s830_s21  ;;  %449 = vrot.lane.b32.xlu1 %v444_v33, %s831_s22 }
 0x1a2   : > { %492 = vperm.xlu2 %813, %v773_v34   ;;  %484 = vperm.xlu1 %812, %v772_v35   ;;  %v668_v34 = vld [vmem:[%s1071_s8 + $0x18] sm:$0xff] }
 0x1a3   : > { %v787_v35 = vld [vmem:[%s1066_s3 + $0x18] sm:$0xff] }
 0x1aa   : > { %513 = vperm.xlu2 %813, %v776_v36  }
 0x1b2   : > { %555 = vperm.xlu2 %813, %v779_v37   ;;  %v667_v37 = vld [vmem:[%s1071_s8 + $0x10] sm:$0xff] }
 0x1ba   : > { %576 = vperm.xlu2 %813, %v782_v38   ;;  %v666_v38 = vld [vmem:[%s1071_s8 + $0x8] sm:$0xff] }
 0x1f4   : > { %v448_v41 = vpop.permute.xlu2 %447 }
 0x1fc   : > { %v493_v47 = vpop.permute.xlu2 %492 }
 0x204   : > { %v514_v56 = vpop.permute.xlu2 %513 }
 0x20c   : > { %v450_v39 = vpop.permute.xlu1 %449  ;;  %v556_v0 = vpop.permute.xlu2 %555 }
 0x20d   : > { %473 = vmatpush.msra.mxu1 %v450_v39  ;;  %v665_v39 = vld [vmem:[%s1071_s8] sm:$0xff] }
 0x20f   : > { %474 = vmatpush.msra.mxu1 %v444_v33  ;;  %v669_v33 = vld [vmem:[%s1071_s8 + $0x20] sm:$0xff] }
 0x211   : > { %475 = vmatpush.msra.mxu1 %v448_v41 }
 0x212   : > { %771 = vmatmul.msk.f32.vlgmr.msra.gmra.mxu1 %vm456_vm1, %v445_v40 }
 0x214   : > { %v485_v45 = vpop.permute.xlu1 %484  ;;  %v577_v11 = vpop.permute.xlu2 %576 }
 0x28f   : > { %v477_v43 = vpop.f32.mrf.mxu1 }
 0x290   : > { %v478_v44 = vadd.f32 %v477_v43, %v454_v42 }
 0x292   : > { %v487_v46 = vmul.f32 %v485_v45, %v478_v44 }
 0x294   : > { %v495_v48 = vadd.f32 %v493_v47, %v487_v46  ;;  %v819_v46 = vld [vmem:[%s1072_s9] ss:$0 sm:$0xff] }
 0x296   : > { %v496_v50 = vmax.f32 %v495_v48, 0.0 }
 0x298   : > { %v502_v51 = vmul.f32 %v816_v49, %v496_v50 }
 0x29a   : > { %507 = vrot.lane.b32.xlu1 %v502_v51, %s835_s27  ;;  %509 = vrot.lane.b32.xlu0 %v502_v51, %s836_s28 }
 0x2a2   : > { %547 = vperm.xlu1 %812, %v778_v52   ;;  %539 = vrot.lane.b32.xlu0 %v421_v26, %s831_s22 }
 0x30c   : > { %v510_v53 = vpop.permute.xlu0 %509  ;;  %v508_v55 = vpop.permute.xlu1 %507 }
 0x30d   : > { %532 = vmatpush.msra.mxu3 %v510_v53 }
 0x30f   : > { %533 = vmatpush.msra.mxu3 %v502_v51 }
 0x311   : > { %534 = vmatpush.msra.mxu3 %v508_v55 }
 0x312   : > { %777 = vmatmul.msk.f32.vlgmr.msra.gmra.mxu3 %vm456_vm1, %v775_v54 }
 0x314   : > { %v540_v57 = vpop.permute.xlu0 %539  ;;  %v548_v62 = vpop.permute.xlu1 %547 }
 0x315   : > { %v541_v59 = vmax.f32 %v421_v26, %v540_v57  ;;  %v676_v26 = vld [vmem:[%s1071_s8 + $0x58] sm:$0xff] }
 0x316   : > { %689 = vmatpush.msra.mxu2 %v676_v26 }
 0x318   : > { %690 = vmatpush.msra.mxu2 %v675_v27 }
 0x31a   : > { %691 = vmatpush.msra.mxu2 %v674_v28 }
 0x31c   : > { %692 = vmatpush.msra.mxu2 %v673_v29 }
 0x31e   : > { %693 = vmatpush.msra.mxu2 %v672_v30 }
 0x320   : > { %694 = vmatpush.msra.mxu2 %v671_v31 }
 0x322   : > { %695 = vmatpush.msra.mxu2 %v670_v32 }
 0x324   : > { %696 = vmatpush.msra.mxu2 %v669_v33 }
 0x326   : > { %697 = vmatpush.msra.mxu2 %v668_v34 }
 0x328   : > { %698 = vmatpush.msra.mxu2 %v667_v37 }
 0x32a   : > { %699 = vmatpush.msra.mxu2 %v666_v38 }
 0x32c   : > { %700 = vmatpush.msra.mxu2 %v665_v39 }
 0x395   : > { %v536_v58 = vpop.f32.mrf.mxu3 }
 0x396   : > { %v537_v60 = vadd.f32 %v536_v58, %v514_v56 }
 0x398   : > { %v974_v61 = vadd.f32 %v541_v59, %v537_v60 }
 0x39a   : > { %v550_v63 = vmul.f32 %v548_v62, %v974_v61 }
 0x39c   : > { %v558_v1 = vadd.f32 %v556_v0, %v550_v63 }
 0x39e   : > { %v559_v3 = vmax.f32 %v558_v1, 0.0 }
 0x3a0   : > { %v565_v4 = vmul.f32 %v817_v2, %v559_v3 }
 0x3a2   : > { %570 = vrot.lane.b32.xlu1 %v565_v4, %s836_s28  ;;  %572 = vrot.lane.b32.xlu0 %v565_v4, %s837_s16 }
 0x3aa   : > { %614 = vperm.xlu1 %812, %v785_v5   ;;  %606 = vperm.xlu0 %811, %v784_v6  }
 0x3b2   : > { %635 = vperm.xlu1 %812, %v788_v7  }
 0x414   : > { %v573_v8 = vpop.permute.xlu0 %572  ;;  %v571_v9 = vpop.permute.xlu1 %570 }
 0x415   : > { %595 = vmatpush.msrb.mxu3 %v573_v8 }
 0x417   : > { %596 = vmatpush.msrb.mxu3 %v571_v9 }
 0x419   : > { %597 = vmatpush.msrb.mxu3 %v565_v4 }
 0x41a   : > { %783 = vmatmul.msk.f32.vlgmr.msrb.gmra.mxu3 %vm456_vm1, %v781_v10 }
 0x41c   : > { %v607_v14 = vpop.permute.xlu0 %606  ;;  %v615_v16 = vpop.permute.xlu1 %614 }
 0x424   : > { %v636_v41 = vpop.permute.xlu1 %635 }
 0x49d   : > { %v599_v12 = vpop.f32.mrf.mxu3 }
 0x49e   : > { %v600_v13 = vadd.f32 %v599_v12, %v577_v11 }
 0x4a0   : > { %v609_v15 = vmul.f32 %v607_v14, %v600_v13 }
 0x4a2   : > { %v617_v17 = vadd.f32 %v615_v16, %v609_v15 }
 0x4a4   : > { %v618_v19 = vmax.f32 %v617_v17, 0.0 }
 0x4a6   : > { %v624_v20 = vmul.f32 %v818_v18, %v618_v19 }
 0x4a8   : > { %629 = vrot.lane.b32.xlu0 %v624_v20, %s838_s30  ;;  %631 = vrot.lane.b32.xlu2 %v624_v20, %s837_s16 }
 0x4b0   : > { %661 = vrot.lane.b32.xlu2 %v974_v61, %s836_s28 }
 0x502   : > { %v632_v25 = vpop.permute.xlu2 %631 }
 0x503   : > { %654 = vmatpush.msrb.mxu1 %v632_v25 }
 0x505   : > { %655 = vmatpush.msrb.mxu1 %v624_v20 }
 0x50a   : > { %v662_v40 = vpop.permute.xlu2 %661 }
 0x50b   : > { %v663_v43 = vmax.f32 %v974_v61, %v662_v40 }
 0x51a   : > { %v630_v36 = vpop.permute.xlu0 %629 }
 0x51b   : > { %656 = vmatpush.msrb.mxu1 %v630_v36 }
 0x51c   : > { %789 = vmatmul.msk.f32.vlgmr.msrb.gmra.mxu1 %vm456_vm1, %v787_v35 }
 0x599   : > { %v658_v42 = vpop.f32.mrf.mxu1 }
 0x59a   : > { %v659_v44 = vadd.f32 %v658_v42, %v636_v41 }
 0x59c   : > { %v664_v45 = vadd.f32 %v663_v43, %v659_v44 }
 0x59e   : > { %701 = vmatmul.f32.vlgmr.msra.gmra.mxu2 %v664_v45 }
 0x621   : > { %v702_v47 = vpop.f32.mrf.mxu2 }
 0x622   : > { %v703_v48 = vadd.f32 %v819_v46, %v702_v47 }
 0x624   : > { %706 = vst.msk [vmem:[%s354_s17] sm:$0xff] %vm705_vm2, %v703_v48 }
 0x625 PF: > { %s20_s13 = sadd.s32 1, %s826_s13  }
 0x626   : > { %p17_p4 = scmp.ge.s32.totalorder %s20_s13, 4  }
 0x628   :  { %19 = sbr.rel (!%p17_p4) target bundleno = 1 (0x1), region = 108 }

</bundles_post_ra>
